<compile_context>
chip_gen: v5e
topology: v5e:2x2
jax: 0.10.0
libtpu: 0.0.40
codegen_flags: <defaults>
</compile_context>

<pallas_src>
import math

import numpy as np

import jax
import jax.numpy as jnp
from jax.experimental import pallas as pl
from jax.experimental.pallas import tpu as pltpu

N_OUTPUT = 1089  # 33 * 33
BLK = 33
FEAT = 32

# Set by a tiny runtime probe in __main__: True if pltpu.roll follows np.roll
# semantics (result[i] = x[i - shift]).  Only affects weight tap ordering.
_ROLL_MATCHES_NUMPY = True

_CONV_NAMES_FEAT = ["1f", "2f", "3f", "4f", "5f", "1b", "2b", "3b", "4b", "5b"]


def _round_up(x, m):
    return (x + m - 1) // m * m


# ----------------------------------------------------------------------------
# pltpu.roll convention probe (guarantees correct tap orientation)
# ----------------------------------------------------------------------------
def _detect_roll_convention():
    def k(x_ref, o_ref):
        o_ref[...] = pltpu.roll(x_ref[...], 1, 1)

    x = np.arange(8 * 128, dtype=np.float32).reshape(8, 128)
    out = np.asarray(
        pl.pallas_call(k, out_shape=jax.ShapeDtypeStruct((8, 128), jnp.float32))(
            jnp.asarray(x)))
    if np.array_equal(out, np.roll(x, 1, axis=1)):
        return True
    if np.array_equal(out, np.roll(x, -1, axis=1)):
        return False
    raise AssertionError("unexpected pltpu.roll semantics")


# ----------------------------------------------------------------------------
# padded-pixel-layout helpers (pure JAX reshapes on the wrapper side)
# ----------------------------------------------------------------------------
def _img_to_padded(x, nl):
    B = x.shape[0]
    npix = (BLK + 2) * (BLK + 2)
    xp = jnp.pad(x, ((0, 0), (0, 0), (1, 1), (1, 1))).reshape(B, 1, npix)
    return jnp.pad(xp, ((0, 0), (0, 0), (0, nl - npix))).astype(jnp.float32)


def _padded_to_img(xp):
    B = xp.shape[0]
    npix = (BLK + 2) * (BLK + 2)
    t = xp[:, :, :npix].reshape(B, 1, BLK + 2, BLK + 2)
    return t[:, :, 1:BLK + 1, 1:BLK + 1]


def _interior_mask(nl):
    npix = (BLK + 2) * (BLK + 2)
    m = jnp.pad(jnp.ones((BLK, BLK), jnp.float32), ((1, 1), (1, 1))).reshape(1, npix)
    return jnp.pad(m, ((0, 0), (0, nl - npix)))


def _phi_to_padded(Phi, nl):
    """(n_in, 1089) row-major 33x33 -> (n_in, nl) with zero halo/pad columns."""
    n_in = Phi.shape[0]
    npix = (BLK + 2) * (BLK + 2)
    phi_img = Phi.reshape(n_in, BLK, BLK)
    phi_pad = jnp.pad(phi_img, ((0, 0), (1, 1), (1, 1))).reshape(n_in, npix)
    return jnp.pad(phi_pad, ((0, 0), (0, nl - npix))).astype(jnp.float32)


# ----------------------------------------------------------------------------
# Initial PhiTb = reshape(Phi^T Phi vec(x)) in padded layout (once per forward)
# ----------------------------------------------------------------------------
def _phitb_kernel(x_ref, phi_ref, o_ref):
    phi = phi_ref[...]                                           # (n_in, nl)
    s = jnp.einsum("mk,nk->mn", x_ref[...], phi,
                   preferred_element_type=jnp.float32)           # x @ Phi^T
    o_ref[...] = jnp.dot(s, phi, preferred_element_type=jnp.float32)


def phitb_pallas(x_pad, phi_pad):
    B, _, nl = x_pad.shape
    n_in = phi_pad.shape[0]
    return pl.pallas_call(
        _phitb_kernel,
        out_shape=jax.ShapeDtypeStruct((B, 1, nl), jnp.float32),
        grid=(B,),
        in_specs=[pl.BlockSpec((None, 1, nl), lambda b: (b, 0, 0)),
                  pl.BlockSpec((n_in, nl), lambda b: (0, 0))],
        out_specs=pl.BlockSpec((None, 1, nl), lambda b: (b, 0, 0)),
        compiler_params=pltpu.CompilerParams(dimension_semantics=("parallel",)),
    )(x_pad, phi_pad)


# ----------------------------------------------------------------------------
# Fused per-layer kernel: gradient step + BasicBlock + state update
# ----------------------------------------------------------------------------
def _make_layer_kernel(H, W, feat, nl):
    Hp, Wp = H + 2, W + 2
    npix = Hp * Wp
    # centered tap offsets on the flattened (Hp, Wp) grid
    offs = [(dy - 1) * Wp + (dx - 1) for dy in range(3) for dx in range(3)]
    # static safety check: interior outputs never read wrapped / padding lanes
    assert Wp + 1 + min(offs) >= 0
    assert H * Wp + W + max(offs) < npix <= nl
    shifts = [(-d) % nl for d in offs]

    def shifted(x, t):
        s = shifts[t]
        return x if s == 0 else pltpu.roll(x, s, 1)

    def kernel(p_ref, xold_ref, yold_ref, phitb_ref, mask_ref, phi_ref,
               wd_ref, bd_ref, wm_ref, bm_ref, wg_ref, bg_ref,
               ynew_ref, xnew_ref):
        g0, g1, sp_l = p_ref[0], p_ref[1], p_ref[2]
        sp_t, w_sq, c2 = p_ref[3], p_ref[4], p_ref[5]
        k4a, k4b = p_ref[6], p_ref[7]
        w1n, w2n, w3n, w4n = p_ref[8], p_ref[9], p_ref[10], p_ref[11]

        mask1 = mask_ref[...]                                    # (1, nl)
        maskf = jnp.broadcast_to(mask1, (feat, nl))              # hoisted once

        xold = xold_ref[...]                                     # (1, nl)
        yold = yold_ref[...]
        phi = phi_ref[...]                                       # (n_in, nl)

        # -- fused gradient step (former xinput/PhiTPhi kernels), f32 --
        z = g0 * xold + g1 * yold
        s = jnp.einsum("mk,nk->mn", z, phi,
                       preferred_element_type=jnp.float32)       # z @ Phi^T
        r = jnp.dot(s, phi, preferred_element_type=jnp.float32)  # ... @ Phi
        x_in = yold - sp_l * r + sp_l * phitb_ref[...]           # zero halo

        # -- conv helpers: 9 per-tap bf16 matmuls, f32 accumulation --
        def conv_feat(xb, idx, bias):
            acc = jnp.dot(wm_ref[idx * 9], shifted(xb, 0),
                          preferred_element_type=jnp.float32)
            for t in range(1, 9):
                acc = acc + jnp.dot(wm_ref[idx * 9 + t], shifted(xb, t),
                                    preferred_element_type=jnp.float32)
            return acc + bias

        def layer(xb, idx):
            v = conv_feat(xb, idx, bm_ref[idx])
            return (jnp.maximum(v, 0.0) * maskf).astype(jnp.bfloat16)

        # conv_D (cin == 1): 9 broadcast multiply-adds on the VPU (tiny)
        acc_d = bd_ref[...]
        for t in range(9):
            acc_d = acc_d + wd_ref[t] * shifted(x_in, t)
        x_D = (jnp.maximum(acc_d, 0.0) * maskf).astype(jnp.bfloat16)

        x_f1 = layer(x_D, 0)
        x_f2 = layer(x_f1, 1)
        x_f3 = layer(x_f2, 2)
        x_f4 = layer(x_f3, 3)
        x_fw = conv_feat(x_f4, 4, bm_ref[4])                     # conv5_forward

        # shrinkage fused as the conv5_forward epilogue (VPU/EUP, f32)
        sgn = jnp.sign(x_fw)
        ax = jnp.abs(x_fw)
        x_st1 = sgn * jnp.maximum(ax - sp_t, 0.0)
        x_st2 = x_fw * c2
        x_tmp = sgn * jnp.maximum(ax - w_sq, 0.0)
        x_tmp1 = jnp.where(jnp.abs(x_tmp) > 0.0, jnp.ones_like(x_tmp), x_tmp)
        x_st3 = x_tmp + x_tmp1 * w_sq
        x_st4 = x_fw + k4b * sgn * (1.0 - jnp.sqrt(1.0 + k4a * ax))
        x_st = ((w1n * x_st1 + w2n * x_st2 + w3n * x_st3 + w4n * x_st4)
                * maskf).astype(jnp.bfloat16)

        x_b1 = layer(x_st, 5)
        x_b2 = layer(x_b1 + x_f4, 6)
        x_b3 = layer(x_b2 + x_f3, 7)
        x_b4 = layer(x_b3 + x_f2, 8)
        x_bw = layer(x_b4 + x_f1, 9)

        # conv_G (cout == 1): 9 per-tap (1,feat)@(feat,nl) matmuls
        xg = x_bw + x_D
        acc_g = jnp.dot(wg_ref[0], shifted(xg, 0),
                        preferred_element_type=jnp.float32)
        for t in range(1, 9):
            acc_g = acc_g + jnp.dot(wg_ref[t], shifted(xg, t),
                                    preferred_element_type=jnp.float32)
        x_G = acc_g + bg_ref[...]

        ynew = jnp.maximum(x_in + x_G, 0.0) * mask1
        ynew_ref[...] = ynew
        xnew_ref[...] = g0 * xold + g1 * ynew                    # state update

    return kernel


def _pack_w_taps(w):
    """(cout, cin, 3, 3) -> (9, cout, cin), tap-major to match the roll taps."""
    cout, cin = w.shape[0], w.shape[1]
    wt = jnp.transpose(w, (2, 3, 0, 1)).reshape(9, cout, cin)
    if not _ROLL_MATCHES_NUMPY:
        wt = wt[::-1]
    return wt


def _pack_w_first(w):
    """(cout, 1, 3, 3) -> (9, cout, 1) for the broadcast first-layer path."""
    wt = jnp.transpose(w, (2, 3, 0, 1)).reshape(9, w.shape[0], 1)
    if not _ROLL_MATCHES_NUMPY:
        wt = wt[::-1]
    return wt


def _layer_call(p, xold, yold, phitb, mask, phi_pad, wd, bd, wm, bm, wg, bg,
                feat, nl):
    B = xold.shape[0]
    n_in = phi_pad.shape[0]
    flops = B * (nl * (2 * 9 * feat + 10 * 2 * 9 * feat * feat + 2 * 9 * feat)
                 + 4 * nl * n_in)
    cost = pl.CostEstimate(flops=int(flops),
                           transcendentals=int(B * feat * nl),
                           bytes_accessed=int(wm.size * 2 + phi_pad.size * 4
                                              + 5 * B * nl * 4))
    return pl.pallas_call(
        _make_layer_kernel(BLK, BLK, feat, nl),
        out_shape=(jax.ShapeDtypeStruct((B, 1, nl), jnp.float32),   # ynew
                   jax.ShapeDtypeStruct((B, 1, nl), jnp.float32)),  # xnew
        grid=(B,),
        in_specs=[
            pl.BlockSpec(memory_space=pltpu.MemorySpace.SMEM),       # scalars
            pl.BlockSpec((None, 1, nl), lambda b: (b, 0, 0)),        # xold
            pl.BlockSpec((None, 1, nl), lambda b: (b, 0, 0)),        # yold
            pl.BlockSpec((None, 1, nl), lambda b: (b, 0, 0)),        # PhiTb
            pl.BlockSpec((1, nl), lambda b: (0, 0)),                 # interior mask
            pl.BlockSpec((n_in, nl), lambda b: (0, 0)),              # padded Phi
            pl.BlockSpec((9, feat, 1), lambda b: (0, 0, 0)),         # conv_D taps
            pl.BlockSpec((feat, 1), lambda b: (0, 0)),               # conv_D bias
            pl.BlockSpec((90, feat, feat), lambda b: (0, 0, 0)),     # 10 feat convs
            pl.BlockSpec((10, feat, 1), lambda b: (0, 0, 0)),        # their biases
            pl.BlockSpec((9, 1, feat), lambda b: (0, 0, 0)),         # conv_G taps
            pl.BlockSpec((1, 1), lambda b: (0, 0)),                  # conv_G bias
        ],
        out_specs=(pl.BlockSpec((None, 1, nl), lambda b: (b, 0, 0)),
                   pl.BlockSpec((None, 1, nl), lambda b: (b, 0, 0))),
        compiler_params=pltpu.CompilerParams(dimension_semantics=("parallel",)),
        cost_estimate=cost,
    )(p, xold, yold, phitb, mask, phi_pad, wd, bd, wm, bm, wg, bg)


# ----------------------------------------------------------------------------
# Model forward (Pallas path)
# ----------------------------------------------------------------------------
def gil_forward(params, x):
    B, cin, H, W = x.shape
    # TODO(synk): multi-block (H,W > 33) images would need a per-patch Phi path;
    # the fused kernel assumes the canonical 33x33 CS block.
    assert cin == 1 and H == BLK and W == BLK
    feat = params["blocks"][0]["W_1f"].shape[0]
    npix = (BLK + 2) * (BLK + 2)
    nl = _round_up(npix, 128)

    Phi = params["Phi_scale"] * jnp.where(params["Phi"] >= 0, 1.0, -1.0)  # MySign
    phi_pad = _phi_to_padded(Phi, nl)
    x_pad = _img_to_padded(x, nl)
    mask = _interior_mask(nl)

    phitb = phitb_pallas(x_pad, phi_pad)          # sampling + reconstruction

    xold = phitb
    yold = phitb
    xnew = phitb
    for i, bp in enumerate(params["blocks"]):
        theta1 = params["w_theta1"] * i + params["b_theta1"]
        mu1 = params["w_mu1"] * i + params["b_mu1"]
        gamma = jax.nn.softplus(params["w_gamma"] * i + params["b_gamma"])
        gamma_s = jax.nn.softmax(jnp.stack([1.0 - gamma, gamma]))
        sp = jax.nn.softplus(theta1)
        sp_l = jax.nn.softplus(mu1)
        wsum = bp["weight1"] + bp["weight2"] + bp["weight3"] + bp["weight4"]
        # scalar params (shrinkage weights pre-scaled: no in-kernel divide)
        p = jnp.stack([gamma_s[0], gamma_s[1], sp_l,
                       sp, jnp.sqrt(2.0 * sp), 1.0 / (1.0 + 2.0 * sp),
                       16.0 / (9.0 * sp * sp), 9.0 * sp * sp / 8.0,
                       bp["weight1"] / wsum, bp["weight2"] / wsum,
                       bp["weight3"] / wsum, bp["weight4"] / wsum]
                      ).astype(jnp.float32)

        wd = _pack_w_first(bp["W_D"]).astype(jnp.float32)          # (9, feat, 1)
        bd = bp["b_D"].reshape(feat, 1).astype(jnp.float32)
        wm = jnp.concatenate([_pack_w_taps(bp["W_" + n]) for n in _CONV_NAMES_FEAT],
                             axis=0).astype(jnp.bfloat16)          # (90, feat, feat)
        bm = jnp.stack([bp["b_" + n] for n in _CONV_NAMES_FEAT]
                       ).reshape(10, feat, 1).astype(jnp.float32)
        wg = _pack_w_taps(bp["W_G"]).astype(jnp.bfloat16)          # (9, 1, feat)
        bg = bp["b_G"].reshape(1, 1).astype(jnp.float32)

        ynew, xnew = _layer_call(p, xold, yold, phitb, mask, phi_pad,
                                 wd, bd, wm, bm, wg, bg, feat, nl)
        xold, yold = xnew, ynew

    return _padded_to_img(xnew), Phi


# ----------------------------------------------------------------------------
# Deterministic parameter initialization (synthetic; matches module shapes)
# ----------------------------------------------------------------------------
def init_block(key, features=FEAT):
    names = (["D"] + [f"{i}f" for i in range(1, 6)]
             + [f"{i}b" for i in range(1, 6)] + ["G"])
    cins = [1] + [features] * 10 + [features]
    couts = [features] * 11 + [1]
    keys = jax.random.split(key, len(names))
    bp = {}
    for k, name, ci, co in zip(keys, names, cins, couts):
        kw, kb = jax.random.split(k)
        bound = 1.0 / math.sqrt(ci * 9)
        bp["W_" + name] = jax.random.uniform(kw, (co, ci, 3, 3), jnp.float32, -bound, bound)
        bp["b_" + name] = jax.random.uniform(kb, (co,), jnp.float32, -bound, bound)
    for i in range(1, 5):
        bp[f"weight{i}"] = jnp.asarray(1.0, jnp.float32)
    return bp


def init_params(key, layer_no, n_input, features=FEAT):
    keys = jax.random.split(key, layer_no + 1)
    std = math.sqrt(2.0 / (n_input + N_OUTPUT))  # xavier_normal
    return {
        "Phi": std * jax.random.normal(keys[0], (n_input, N_OUTPUT), jnp.float32),
        "Phi_scale": jnp.asarray(0.01, jnp.float32),
        "w_theta1": jnp.asarray(-0.5, jnp.float32),
        "b_theta1": jnp.asarray(-2.0, jnp.float32),
        "w_mu1": jnp.asarray(-0.2, jnp.float32),
        "b_mu1": jnp.asarray(0.1, jnp.float32),
        "w_gamma": jnp.asarray(0.5, jnp.float32),
        "b_gamma": jnp.asarray(0.0, jnp.float32),
        "blocks": [init_block(k, features) for k in keys[1:]],
    }


# ----------------------------------------------------------------------------
# Pure-JAX float32 reference (for a correctness check of the Pallas path)
# ----------------------------------------------------------------------------
def _to_patches(img):
    B, _, H, W = img.shape
    nbh, nbw = H // BLK, W // BLK
    t = img.reshape(B, nbh, BLK, nbw, BLK)
    t = jnp.transpose(t, (0, 1, 3, 2, 4)).reshape(B * nbh * nbw, BLK * BLK)
    return t


def _from_patches(p, B, H, W):
    nbh, nbw = H // BLK, W // BLK
    t = p.reshape(B, nbh, nbw, BLK, BLK)
    t = jnp.transpose(t, (0, 1, 3, 2, 4)).reshape(B, 1, H, W)
    return t


def _conv_ref(x, w, b):
    B, cin, H, W = x.shape
    cout = w.shape[0]
    xp_ = jnp.pad(x, ((0, 0), (0, 0), (1, 1), (1, 1)))
    out = jnp.zeros((B, cout, H, W), jnp.float32)
    for dy in range(3):
        for dx in range(3):
            out = out + jnp.einsum("bchw,oc->bohw",
                                   xp_[:, :, dy:dy + H, dx:dx + W], w[:, :, dy, dx])
    return out + b[None, :, None, None]


def _basicblock_ref(bp, x_input, soft_thr):
    relu = lambda t: jnp.maximum(t, 0.0)
    x_D = relu(_conv_ref(x_input, bp["W_D"], bp["b_D"]))
    x_f1 = relu(_conv_ref(x_D, bp["W_1f"], bp["b_1f"]))
    x_f2 = relu(_conv_ref(x_f1, bp["W_2f"], bp["b_2f"]))
    x_f3 = relu(_conv_ref(x_f2, bp["W_3f"], bp["b_3f"]))
    x_f4 = relu(_conv_ref(x_f3, bp["W_4f"], bp["b_4f"]))
    x_fw = _conv_ref(x_f4, bp["W_5f"], bp["b_5f"])
    sp = jax.nn.softplus(soft_thr)
    sgn = jnp.sign(x_fw)
    ax = jnp.abs(x_fw)
    x_st1 = sgn * jnp.maximum(ax - sp, 0.0)
    x_st2 = x_fw / (1.0 + 2.0 * sp)
    w = jnp.sqrt(2.0 * sp)
    x_tmp = sgn * jnp.maximum(ax - w, 0.0)
    x_tmp1 = jnp.where(jnp.abs(x_tmp) > 0.0, jnp.ones_like(x_tmp), x_tmp)
    x_st3 = x_tmp + x_tmp1 * w
    p4 = 1.0 + 16.0 * ax / (9.0 * sp * sp)
    x_st4 = x_fw + 9.0 * sp * sp * sgn * (1.0 - jnp.sqrt(p4)) / 8.0
    w1, w2, w3, w4 = bp["weight1"], bp["weight2"], bp["weight3"], bp["weight4"]
    x_st = (w1 * x_st1 + w2 * x_st2 + w3 * x_st3 + w4 * x_st4) / (w1 + w2 + w3 + w4)
    x_b1 = relu(_conv_ref(x_st, bp["W_1b"], bp["b_1b"]))
    x_b2 = relu(_conv_ref(x_b1 + x_f4, bp["W_2b"], bp["b_2b"]))
    x_b3 = relu(_conv_ref(x_b2 + x_f3, bp["W_3b"], bp["b_3b"]))
    x_b4 = relu(_conv_ref(x_b3 + x_f2, bp["W_4b"], bp["b_4b"]))
    x_bw = relu(_conv_ref(x_b4 + x_f1, bp["W_5b"], bp["b_5b"]))
    x_G = _conv_ref(x_bw + x_D, bp["W_G"], bp["b_G"])
    return relu(x_input + x_G)


def gil_forward_ref(params, x):
    B, _, H, W = x.shape
    Phi_bin = jnp.where(params["Phi"] >= 0, 1.0, -1.0)
    Phi = params["Phi_scale"] * Phi_bin
    PhiTb_p = _to_patches(x) @ Phi.T @ Phi
    PhiTb = _from_patches(PhiTb_p, B, H, W)
    xold = PhiTb
    yold = PhiTb
    xnew = PhiTb
    for i, bp in enumerate(params["blocks"]):
        theta1 = params["w_theta1"] * i + params["b_theta1"]
        mu1 = params["w_mu1"] * i + params["b_mu1"]
        gamma = jax.nn.softplus(params["w_gamma"] * i + params["b_gamma"])
        gamma_s = jax.nn.softmax(jnp.stack([1.0 - gamma, gamma]))
        z = gamma_s[0] * xold + gamma_s[1] * yold
        sp_l = jax.nn.softplus(mu1)
        r = _from_patches(_to_patches(z) @ Phi.T @ Phi, B, H, W)
        x_input = yold - sp_l * r + sp_l * PhiTb
        ynew = _basicblock_ref(bp, x_input, theta1)
        xnew = gamma_s[0] * xold + gamma_s[1] * ynew
        xold, yold = xnew, ynew
    return xnew, Phi


if __name__ == "__main__":
    _ROLL_MATCHES_NUMPY = _detect_roll_convention()

    key = jax.random.PRNGKey(0)
    kp, kx = jax.random.split(key, 2)

    n_input = 10       # cs_ratio = 1  ->  ratio_dict[1] = 10
    layer_no = 2
    B, H, W = 2, 33, 33

    params = init_params(kp, layer_no, n_input)
    x = jax.random.uniform(kx, (B, 1, H, W), jnp.float32)

    fwd = jax.jit(gil_forward)
    x_final, Phi_out = fwd(params, x)
    jax.block_until_ready(x_final)
    jax.block_until_ready(Phi_out)

    assert x_final.shape == (B, 1, H, W)
    assert Phi_out.shape == (n_input, N_OUTPUT)

    # correctness vs pure-JAX float32 reference.  The kernel uses bf16 matmuls,
    # bf16-resident skip activations and f32 accumulation, and the shrinkage
    # x_st3 branch is discontinuous, so a loose relative-L2 tolerance is used;
    # genuine tap/mask bugs produce errors far above this.
    x_ref, _ = jax.jit(gil_forward_ref)(params, x)
    err = float(jnp.linalg.norm(x_final - x_ref))
    den = max(float(jnp.linalg.norm(x_ref)), 1e-3)
    if err / den > 0.10:
        raise AssertionError(f"Pallas forward mismatch: rel L2 err {err / den:.4f}")

    print("KERNEL_OK")
</pallas_src>

<mosaic_0001>
module attributes {stable_mosaic.version = 11 : i64} {
  func.func @k(%arg0: memref<8x128xf32, #tpu.memory_space<vmem>>, %arg1: memref<8x128xf32, #tpu.memory_space<vmem>>) attributes {dimension_semantics = [], scalar_prefetch = 0 : i64, scratch_operands = 0 : i64, tpu.core_type = #tpu.core_type<tc>} {
    %c0 = arith.constant 0 : index
    %c0_0 = arith.constant 0 : index
    %0 = vector.load %arg0[%c0, %c0_0] : memref<8x128xf32, #tpu.memory_space<vmem>>, vector<8x128xf32>
    %c1_i32 = arith.constant 1 : i32
    %1 = tpu.dynamic_rotate %0 by %c1_i32 dim 1 : vector<8x128xf32>, i32 -> vector<8x128xf32>
    %c0_1 = arith.constant 0 : index
    %c0_2 = arith.constant 0 : index
    %2 = vector.load %arg1[%c0_1, %c0_2] : memref<8x128xf32, #tpu.memory_space<vmem>>, vector<8x128xf32>
    tpu.vector_store %arg1[%c0_1, %c0_2], %1 {strides = array<i32>} : memref<8x128xf32, #tpu.memory_space<vmem>>, vector<8x128xf32>,
    return
  }
}

</mosaic_0001>

<bundles_post_ra>
// kernel: tpu_custom_call.1
= control target key start
LH: loop header
LB: loop body
LE: loop exit
PB: predicated region body
PF: predicated region fallthrough
CT: control target
= control target key end

     0   :  { %6 = vsyncpa [#allocation3], 0  ;;  %s118_s0 = inlined_call_operand.hbm [shape: f32[8,128], index: 0, kind: input, shape index: {}]   ;;  %s119_s1 = inlined_call_operand.hbm [shape: f32[8,128], index: 1, kind: output, shape index: {}]  }
   0x1   :  { %7 = vsyncpa [#allocation4], 0  ;;  %s13_s8 = sshll.u32 %s118_s0, 4  ;;  %s99_s9 = smov [#allocation2]   ;;  %s14_s8 = int_to_ptr.hbm [resolvable:$true] %s13_s8 }
   0x2   :  { %s15_s10 = sshll.u32 %s99_s9, 4  ;;  %s16_s10 = int_to_ptr.vmem [resolvable:$true] %s15_s10 }
   0x3   :  { %18 = dma.hbm_to_vmem [thread:$0]  %s14_s8, 128, %s16_s10, [#allocation3]  }
   0x4   :  { %95 = dma.done.wait [#allocation3], 128  }
   0x5   :  { %96 = vsyncadd [#allocation3], 4294967168  ;;  %v23_v0 = vld [vmem:[#allocation2] sm:$0xff]  ;;  %s100_s11 = smov 1   ;;  %s101_s12 = smov [#allocation5]  }
   0x6   :  { %24 = vrot.lane.b32.xlu0 %v23_v0, %s100_s11  ;;  %s32_s13 = sshll.u32 %s101_s12, 4  ;;  %s34_s16 = sshll.u32 %s119_s1, 4  ;;  %s33_s13 = int_to_ptr.vmem [resolvable:$true] %s32_s13  ;;  %s35_s16 = int_to_ptr.hbm [resolvable:$true] %s34_s16 }
  0x78   :  { %v25_v1 = vpop.permute.xlu0 %24 }
  0x79   :  { %26 = vst [vmem:[#allocation5] sm:$0xff] %v25_v1 }
  0x7a   :  { %37 = dma.vmem_to_hbm [thread:$0]  %s33_s13, 128, %s35_s16, [#allocation4]  }
  0x7b   :  { %97 = dma.done.wait [#allocation4], 128  }
  0x7c   :  { %98 = vsyncadd [#allocation4], 4294967168 }
  0x7d   :  { %42 = vsyncpa [#allocation3], 1 }
  0x7e   :  { %43 = vsyncpa [#allocation4], 1 }

</bundles_post_ra>
